<compile_context>
chip_gen: v7x
topology: tpu7x:2x2x1
jax: 0.10.0
libtpu: 0.0.40
codegen_flags: <defaults>
</compile_context>

<pallas_src>
import math

import jax
import jax.numpy as jnp
from jax.experimental import pallas as pl
from jax.experimental.pallas import tpu as pltpu

# "config" stand-ins (config module is not provided in the source file).
CHANNELS = 3
IMAGE_SIZE = (32, 24)  # (W, H); interpolate(size=(IMAGE_SIZE[1], IMAGE_SIZE[0]))
HIDDEN_DIMS = [1024 * 4, 1024, 512, 128, 32, 16, 8]


# ---------------------------------------------------------------------------
# helpers
# ---------------------------------------------------------------------------
def _ceil(a, b):
    return (a + b - 1) // b * b


def _pad2(x, rows, cols):
    return jnp.pad(x, ((0, rows - x.shape[0]), (0, cols - x.shape[1])))


# ---------------------------------------------------------------------------
# Pallas kernel 1: tiled bf16 matmul + bias (f32 accumulate)
# ---------------------------------------------------------------------------
def _matmul_bias_kernel(a_ref, b_ref, bias_ref, o_ref, acc_ref):
    @pl.when(pl.program_id(2) == 0)
    def _():
        acc_ref[...] = jnp.zeros_like(acc_ref)

    acc_ref[...] += jnp.dot(a_ref[...], b_ref[...],
                            preferred_element_type=jnp.float32)

    @pl.when(pl.program_id(2) == pl.num_programs(2) - 1)
    def _():
        o_ref[...] = (acc_ref[...] + bias_ref[...]).astype(o_ref.dtype)


def prepare_linear(w, b):
    """One-time weight prep: pick tiles from (K, N), pad, cast weight to bf16."""
    K, N = w.shape
    Ncp = _ceil(N, 128)
    if Ncp >= 1024:
        tn = 512
    elif Ncp >= 512:
        tn = 256
    else:
        tn = Ncp
    Np = _ceil(Ncp, tn)
    Kcp = _ceil(K, 128)
    tk = min(1024, Kcp)
    Kp = _ceil(Kcp, tk)
    return dict(
        wp=_pad2(w.astype(jnp.bfloat16), Kp, Np),
        bp=_pad2(b.reshape(1, N).astype(jnp.float32), 1, Np),
        K=K, N=N, Kp=Kp, Np=Np, tk=tk, tn=tn)


def pallas_linear_prepared(a, prep, out_dtype=jnp.float32):
    """a: (M, K) any float dtype; prep: dict from prepare_linear -> (M, N)."""
    M, K = a.shape
    assert K == prep['K'], (K, prep['K'])
    Kp, Np, tk, tn = prep['Kp'], prep['Np'], prep['tk'], prep['tn']
    tm = min(256, _ceil(M, 16))          # 16-sublane aligned for bf16 tiles
    Mp = _ceil(M, tm)

    ap = _pad2(a.astype(jnp.bfloat16), Mp, Kp)

    out = pl.pallas_call(
        _matmul_bias_kernel,
        out_shape=jax.ShapeDtypeStruct((Mp, Np), out_dtype),
        grid_spec=pltpu.PrefetchScalarGridSpec(
            num_scalar_prefetch=0,
            grid=(Mp // tm, Np // tn, Kp // tk),
            in_specs=[
                pl.BlockSpec((tm, tk), lambda i, j, k: (i, k)),
                pl.BlockSpec((tk, tn), lambda i, j, k: (k, j)),
                pl.BlockSpec((1, tn), lambda i, j, k: (0, j)),
            ],
            out_specs=pl.BlockSpec((tm, tn), lambda i, j, k: (i, j)),
            scratch_shapes=[pltpu.VMEM((tm, tn), jnp.float32)],
        ),
        compiler_params=pltpu.CompilerParams(
            dimension_semantics=("parallel", "parallel", "arbitrary")),
    )(ap, prep['wp'], prep['bp'])
    return out[:M, :prep['N']]


# ---------------------------------------------------------------------------
# Pallas kernels 2+3: per-channel (column) stats + normalize
# (BatchNorm2d training mode and F.instance_norm; gamma=1, beta=0)
# ---------------------------------------------------------------------------
def _col_stats_kernel(x_ref, sum_ref, sq_ref):
    @pl.when(pl.program_id(0) == 0)
    def _():
        sum_ref[...] = jnp.zeros_like(sum_ref)
        sq_ref[...] = jnp.zeros_like(sq_ref)

    x = x_ref[...].astype(jnp.float32)           # stats always in f32
    sum_ref[...] += jnp.sum(x, axis=0, keepdims=True)
    sq_ref[...] += jnp.sum(x * x, axis=0, keepdims=True)


def _normalize_kernel(x_ref, mean_ref, inv_ref, o_ref):
    xf = x_ref[...].astype(jnp.float32)
    o_ref[...] = ((xf - mean_ref[...]) * inv_ref[...]).astype(o_ref.dtype)


def channel_normalize(x2d, count, eps=1e-5, out_dtype=None):
    """x2d: (M, C). Per-column biased mean/var normalization."""
    M, C = x2d.shape
    if out_dtype is None:
        out_dtype = x2d.dtype
    Cp = _ceil(C, 128)
    tm = min(1024, _ceil(M, 16))
    Mp = _ceil(M, tm)
    xp = _pad2(x2d, Mp, Cp)                      # zero rows add 0 to sums
    grid = (Mp // tm,)

    s, sq = pl.pallas_call(
        _col_stats_kernel,
        out_shape=(jax.ShapeDtypeStruct((8, Cp), jnp.float32),
                   jax.ShapeDtypeStruct((8, Cp), jnp.float32)),
        grid_spec=pltpu.PrefetchScalarGridSpec(
            num_scalar_prefetch=0,
            grid=grid,
            in_specs=[pl.BlockSpec((tm, Cp), lambda i: (i, 0))],
            out_specs=(pl.BlockSpec((8, Cp), lambda i: (0, 0)),
                       pl.BlockSpec((8, Cp), lambda i: (0, 0))),
        ),
        compiler_params=pltpu.CompilerParams(dimension_semantics=("arbitrary",)),
    )(xp)

    mean = s[0:1] / count
    var = sq[0:1] / count - mean * mean
    inv = jax.lax.rsqrt(var + eps)               # padded cols sliced off below

    out = pl.pallas_call(
        _normalize_kernel,
        out_shape=jax.ShapeDtypeStruct((Mp, Cp), out_dtype),
        grid_spec=pltpu.PrefetchScalarGridSpec(
            num_scalar_prefetch=0,
            grid=grid,
            in_specs=[pl.BlockSpec((tm, Cp), lambda i: (i, 0)),
                      pl.BlockSpec((1, Cp), lambda i: (0, 0)),
                      pl.BlockSpec((1, Cp), lambda i: (0, 0))],
            out_specs=pl.BlockSpec((tm, Cp), lambda i: (i, 0)),
        ),
        compiler_params=pltpu.CompilerParams(dimension_semantics=("parallel",)),
    )(xp, mean, inv)
    return out[:M, :C]


def batchnorm2d_nhwc(x):
    N, H, W, C = x.shape
    y = channel_normalize(x.reshape(N * H * W, C), float(N * H * W),
                          out_dtype=x.dtype)
    return y.reshape(N, H, W, C)


def instance_norm_nhwc(x, out_dtype=jnp.float32):
    # batched over N: each (n, c) pair is one column of an (H*W, N*C) matrix
    N, H, W, C = x.shape
    x2 = jnp.transpose(x, (1, 2, 0, 3)).reshape(H * W, N * C)
    y = channel_normalize(x2, float(H * W), out_dtype=out_dtype)
    return jnp.transpose(y.reshape(H, W, N, C), (2, 0, 1, 3))


# ---------------------------------------------------------------------------
# ConvTranspose2d(k=3, s=2, p=1, output_padding=1) via 4-phase decomposition
#   y[2i,2j]     = x[i,j]   W[1,1]
#   y[2i,2j+1]   = x[i,j]   W[1,2] + x[i,j+1]   W[1,0]
#   y[2i+1,2j]   = x[i,j]   W[2,1] + x[i+1,j]   W[0,1]
#   y[2i+1,2j+1] = x[i,j]   W[2,2] + x[i,j+1]   W[2,0]
#                + x[i+1,j] W[0,2] + x[i+1,j+1] W[0,0]
# (W indexed [cin, cout, ky, kx], PyTorch layout; out-of-range x terms are 0)
# ---------------------------------------------------------------------------
def _phase_weight(w_torch):
    """(Cin, Cout, 3, 3) -> (4*Cin, 4*Cout) block matrix for the 4-phase matmul.
    Row blocks: [x, x(j+1), x(i+1), x(i+1,j+1)]; col blocks: [ee, eo, oe, oo]."""
    cin, cout = w_torch.shape[:2]
    t = lambda ky, kx: w_torch[:, :, ky, kx]
    z = jnp.zeros((cin, cout), w_torch.dtype)
    rows = [
        jnp.concatenate([t(1, 1), t(1, 2), t(2, 1), t(2, 2)], axis=1),
        jnp.concatenate([z,       t(1, 0), z,       t(2, 0)], axis=1),
        jnp.concatenate([z,       z,       t(0, 1), t(0, 2)], axis=1),
        jnp.concatenate([z,       z,       z,       t(0, 0)], axis=1),
    ]
    return jnp.concatenate(rows, axis=0)


def _first_deconv_weight(w_torch):
    """1x1 spatial input: only taps (1,1),(1,2),(2,1),(2,2) ever contribute."""
    return jnp.concatenate([w_torch[:, :, 1, 1], w_torch[:, :, 1, 2],
                            w_torch[:, :, 2, 1], w_torch[:, :, 2, 2]], axis=1)


def conv_transpose_phase(x, prep):
    """x: (N, H, W, Cin) -> (N, 2H, 2W, Cout) via one prepared matmul."""
    N, H, W, Cin = x.shape
    Cout = prep['N'] // 4
    x01 = jnp.pad(x[:, :, 1:, :], ((0, 0), (0, 0), (0, 1), (0, 0)))
    x10 = jnp.pad(x[:, 1:, :, :], ((0, 0), (0, 1), (0, 0), (0, 0)))
    x11 = jnp.pad(x[:, 1:, 1:, :], ((0, 0), (0, 1), (0, 1), (0, 0)))
    A = jnp.concatenate([x, x01, x10, x11], axis=-1).reshape(N * H * W, 4 * Cin)
    yp = pallas_linear_prepared(A, prep, out_dtype=jnp.bfloat16)  # (M, 4*Cout)
    y = yp.reshape(N, H, W, 2, 2, Cout)
    y = jnp.transpose(y, (0, 1, 3, 2, 4, 5)).reshape(N, 2 * H, 2 * W, Cout)
    return y


# ---------------------------------------------------------------------------
# nearest-neighbor interpolate (PyTorch F.interpolate default) — glue gather
# ---------------------------------------------------------------------------
def interp_nearest_nchw(x, oh, ow):
    N, C, H, W = x.shape
    rows = (jnp.arange(oh) * H) // oh
    cols = (jnp.arange(ow) * W) // ow
    return x[:, :, rows[:, None], cols[None, :]]


def interp_nearest_nhwc(x, oh, ow):
    N, H, W, C = x.shape
    rows = (jnp.arange(oh) * H) // oh
    cols = (jnp.arange(ow) * W) // ow
    return x[:, rows[:, None], cols[None, :], :]


# ---------------------------------------------------------------------------
# deterministic parameter init — ALL matmul-ready prep happens here, once
# ---------------------------------------------------------------------------
def init_params(key, channels):
    keys = iter(jax.random.split(key, 16))

    def lin(k, fan_in, fan_out):
        lim = 1.0 / math.sqrt(fan_in)
        kw, kb = jax.random.split(k)
        return (jax.random.uniform(kw, (fan_in, fan_out), jnp.float32, -lim, lim),
                jax.random.uniform(kb, (fan_out,), jnp.float32, -lim, lim))

    def deconv(k, cin, cout):
        lim = 1.0 / math.sqrt(cin * 9)
        kw, kb = jax.random.split(k)
        return (jax.random.uniform(kw, (cin, cout, 3, 3), jnp.float32, -lim, lim),
                jax.random.uniform(kb, (cout,), jnp.float32, -lim, lim))

    params = {}
    # synthetic backbone head (stand-in for models.Backbone): pooled feats -> 1000
    bw, bb = lin(next(keys), channels * 64, 1000)
    params['backbone'] = prepare_linear(bw, bb)
    # encoder_output: Linear(1000, 4096)
    ew, eb = lin(next(keys), 1000, 1024 * 4)
    params['enc_out'] = prepare_linear(ew, eb)

    # decoder: 6 backbone deconvs + final deconv to CHANNELS, all prepped here
    dims = HIDDEN_DIMS + [channels]
    dec = []
    for i in range(len(dims) - 1):
        w, b = deconv(next(keys), dims[i], dims[i + 1])
        wc = _first_deconv_weight(w) if i == 0 else _phase_weight(w)
        dec.append(prepare_linear(wc, jnp.tile(b, 4)))
    params['decoder'] = dec
    return params


# ---------------------------------------------------------------------------
# AE2.forward
# ---------------------------------------------------------------------------
def ae2_forward(params, x, key):
    """x: NCHW (like the PyTorch module). Returns (recon_x, x, r1, r2, r3)."""
    N, C, H, W = x.shape
    # xt = F.interpolate(x, size=(256, 256))
    xt = interp_nearest_nchw(x, 256, 256)

    # TODO(synk): models.Backbone(pretrained=True) is an external pretrained CNN
    # producing 1000 features; replaced with a deterministic 8x8 avg-pool +
    # Pallas linear stand-in (no clean Pallas equivalent of an unspecified net).
    pooled = xt.reshape(N, C, 8, 32, 8, 32).mean(axis=(3, 5)).reshape(N, C * 64)
    feats = pallas_linear_prepared(pooled, params['backbone'],
                                   out_dtype=jnp.float32)              # (N, 1000)

    # encoder_output: Linear(1000, 4096), then view as (N, 4096, 1, 1)
    z = pallas_linear_prepared(feats, params['enc_out'],
                               out_dtype=jnp.float32)                   # (N, 4096)

    # Decoder: 7x [ConvTranspose2d(3, s2, p1, op1) -> BatchNorm2d]; 1x1 -> 128x128
    dec = params['decoder']
    # layer 1: 1x1 spatial input -> 4-tap matmul, (N, 4*Cout) -> (N, 2, 2, Cout)
    y = pallas_linear_prepared(z, dec[0], out_dtype=jnp.bfloat16)
    y = y.reshape(N, 2, 2, dec[0]['N'] // 4)
    y = batchnorm2d_nhwc(y)
    for prep in dec[1:]:
        y = conv_transpose_phase(y, prep)
        y = batchnorm2d_nhwc(y)

    # F.interpolate(recon_x, size=(IMAGE_SIZE[1], IMAGE_SIZE[0])) then instance_norm
    recon = interp_nearest_nhwc(y, IMAGE_SIZE[1], IMAGE_SIZE[0])
    recon = instance_norm_nhwc(recon, out_dtype=jnp.float32)
    recon = jnp.transpose(recon, (0, 3, 1, 2))  # back to NCHW

    k1, k2, k3 = jax.random.split(key, 3)
    return (recon, x,
            jax.random.normal(k1, (1,), jnp.float32),
            jax.random.normal(k2, (1,), jnp.float32),
            jax.random.normal(k3, (1,), jnp.float32))


if __name__ == "__main__":
    key = jax.random.PRNGKey(0)
    pkey, xkey, nkey = jax.random.split(key, 3)

    params = init_params(pkey, CHANNELS)
    # input images: NCHW, (batch=2, CHANNELS, H=IMAGE_SIZE[1], W=IMAGE_SIZE[0])
    x = jax.random.normal(xkey, (2, CHANNELS, IMAGE_SIZE[1], IMAGE_SIZE[0]),
                          jnp.float32)

    outs = ae2_forward(params, x, nkey)
    outs = jax.block_until_ready(outs)

    recon = outs[0]
    assert recon.shape == x.shape, (recon.shape, x.shape)
    assert bool(jnp.isfinite(recon).all())
    assert outs[1].shape == x.shape
    assert outs[2].shape == (1,) and outs[3].shape == (1,) and outs[4].shape == (1,)
    print("KERNEL_OK")
</pallas_src>

<mosaic_0001>
module attributes {stable_mosaic.version = 11 : i64} {
  func.func @_matmul_bias_kernel(%arg0: i32, %arg1: i32, %arg2: i32, %arg3: memref<16x256xbf16, #tpu.memory_space<vmem>>, %arg4: memref<256x512xbf16, #tpu.memory_space<vmem>>, %arg5: memref<1x512xf32, #tpu.memory_space<vmem>>, %arg6: memref<16x512xf32, #tpu.memory_space<vmem>>, %arg7: memref<16x512xf32, #tpu.memory_space<vmem>>) attributes {dimension_semantics = [#tpu.dimension_semantics<parallel>, #tpu.dimension_semantics<parallel>, #tpu.dimension_semantics<arbitrary>], iteration_bounds = array<i64: 1, 2, 1>, scalar_prefetch = 0 : i64, scratch_operands = 1 : i64, tpu.core_type = #tpu.core_type<tc>, window_params = [{transform_indices = @transform_0, window_bounds = array<i64: 16, 256>}, {transform_indices = @transform_1, window_bounds = array<i64: 256, 512>}, {transform_indices = @transform_2, window_bounds = array<i64: 1, 512>}, {transform_indices = @transform_3, window_bounds = array<i64: 16, 512>}]} {
    %c0_i32 = arith.constant 0 : i32
    %0 = arith.cmpi eq, %arg2, %c0_i32 : i32
    %1 = arith.extui %0 : i1 to i32
    %c0_i32_0 = arith.constant 0 : i32
    %2 = arith.cmpi ne, %1, %c0_i32_0 : i32
    scf.if %2 {
      %cst_10 = arith.constant 0.000000e+00 : f32
      %12 = vector.broadcast %cst_10 : f32 to vector<16x512xf32>
      %c0_11 = arith.constant 0 : index
      %c0_12 = arith.constant 0 : index
      %13 = vector.load %arg7[%c0_11, %c0_12] : memref<16x512xf32, #tpu.memory_space<vmem>>, vector<16x512xf32>
      tpu.vector_store %arg7[%c0_11, %c0_12], %12 {strides = array<i32>} : memref<16x512xf32, #tpu.memory_space<vmem>>, vector<16x512xf32>,
    } else {
    }
    %c0 = arith.constant 0 : index
    %c0_1 = arith.constant 0 : index
    %3 = vector.load %arg7[%c0, %c0_1] : memref<16x512xf32, #tpu.memory_space<vmem>>, vector<16x512xf32>
    %c0_2 = arith.constant 0 : index
    %c0_3 = arith.constant 0 : index
    %4 = vector.load %arg3[%c0_2, %c0_3] : memref<16x256xbf16, #tpu.memory_space<vmem>>, vector<16x256xbf16>
    %c0_4 = arith.constant 0 : index
    %c0_5 = arith.constant 0 : index
    %5 = vector.load %arg4[%c0_4, %c0_5] : memref<256x512xbf16, #tpu.memory_space<vmem>>, vector<256x512xbf16>
    %cst = arith.constant dense<0.000000e+00> : vector<16x512xf32>
    %6 = tpu.matmul %4, %5, %cst {dimension_numbers = #tpu.dot_dimension_numbers<[1], [0], [0], [1], [0, 0, 1, 1], [], []>} : vector<16x256xbf16>, vector<256x512xbf16>, vector<16x512xf32> -> vector<16x512xf32>
    %7 = arith.addf %3, %6 : vector<16x512xf32>
    %c0_6 = arith.constant 0 : index
    %c0_7 = arith.constant 0 : index
    %8 = vector.load %arg7[%c0_6, %c0_7] : memref<16x512xf32, #tpu.memory_space<vmem>>, vector<16x512xf32>
    tpu.vector_store %arg7[%c0_6, %c0_7], %7 {strides = array<i32>} : memref<16x512xf32, #tpu.memory_space<vmem>>, vector<16x512xf32>,
    %c0_i32_8 = arith.constant 0 : i32
    %9 = arith.cmpi eq, %arg2, %c0_i32_8 : i32
    %10 = arith.extui %9 : i1 to i32
    %c0_i32_9 = arith.constant 0 : i32
    %11 = arith.cmpi ne, %10, %c0_i32_9 : i32
    scf.if %11 {
      %c0_10 = arith.constant 0 : index
      %c0_11 = arith.constant 0 : index
      %12 = vector.load %arg7[%c0_10, %c0_11] : memref<16x512xf32, #tpu.memory_space<vmem>>, vector<16x512xf32>
      %c0_12 = arith.constant 0 : index
      %c0_13 = arith.constant 0 : index
      %13 = vector.load %arg5[%c0_12, %c0_13] : memref<1x512xf32, #tpu.memory_space<vmem>>, vector<1x512xf32>
      %14 = vector.broadcast %13 : vector<1x512xf32> to vector<16x512xf32>
      %15 = arith.addf %12, %14 : vector<16x512xf32>
      %c0_14 = arith.constant 0 : index
      %c0_15 = arith.constant 0 : index
      %16 = vector.load %arg6[%c0_14, %c0_15] : memref<16x512xf32, #tpu.memory_space<vmem>>, vector<16x512xf32>
      tpu.vector_store %arg6[%c0_14, %c0_15], %15 {strides = array<i32>} : memref<16x512xf32, #tpu.memory_space<vmem>>, vector<16x512xf32>,
    } else {
    }
    return
  }
  func.func @transform_0(%arg0: i32, %arg1: i32, %arg2: i32) -> (i32, i32) {
    %c0_i32 = arith.constant 0 : i32
    return %arg0, %arg2 : i32, i32
  }
  func.func @transform_1(%arg0: i32, %arg1: i32, %arg2: i32) -> (i32, i32) {
    %c0_i32 = arith.constant 0 : i32
    return %arg2, %arg1 : i32, i32
  }
  func.func @transform_2(%arg0: i32, %arg1: i32, %arg2: i32) -> (i32, i32) {
    %c0_i32 = arith.constant 0 : i32
    %c0_i32_0 = arith.constant 0 : i32
    return %c0_i32, %arg1 : i32, i32
  }
  func.func @transform_3(%arg0: i32, %arg1: i32, %arg2: i32) -> (i32, i32) {
    %c0_i32 = arith.constant 0 : i32
    return %arg0, %arg1 : i32, i32
  }
}

</mosaic_0001>

<bundles_post_ra>
// kernel: tpu_custom_call.1
= control target key start
LH: loop header
LB: loop body
LE: loop exit
PB: predicated region body
PF: predicated region fallthrough
CT: control target
= control target key end

     0   :  { %s1804_s0 = inlined_call_operand.hbm [shape: bf16[16,256], index: 0, kind: input, shape index: {}]   ;;  %s1805_s1 = inlined_call_operand.hbm [shape: bf16[256,1024], index: 1, kind: input, shape index: {}]   ;;  %s1806_s2 = inlined_call_operand.hbm [shape: f32[1,1024], index: 2, kind: input, shape index: {}]   ;;  %s1807_s3 = inlined_call_operand.hbm [shape: f32[16,1024], index: 3, kind: output, shape index: {}]  }
   0x1   :  { %1816 = sst [smem:[#allocation14_spill]] %s1805_s1 }
   0x2   :  { %8 = vsyncpa [#allocation4], 0 }
   0x3   :  { %9 = vsyncpa [#allocation7], 0 }
   0x4   :  { %11 = vsyncpa [#allocation7 + $0x1], 0 }
   0x5   :  { %12 = vsyncpa [#allocation5], 0 }
   0x6   :  { %14 = vsyncpa [#allocation5 + $0x1], 0  ;;  %s1479_s12 = smov 0   ;;  %s1481_s13 = smov 0  }
   0x7   :  { %s1483_s14 = smov 0   ;;  %s1485_s15 = smov 0  }
   0x8   :  { %s1487_s16 = smov 0   ;;  %s1489_s17 = smov 0  }
   0x9 LB: > { %s35_s18 = sadd.s32 1, %s1441_s16  ;;  %s76_s19 = sadd.s32 1, %s1433_s14  ;;  %s1445_s17 = sphi %s1489_s17, %s20_s17   ;;  %s1441_s16 = sphi %s1487_s16, %s1840_s16   ;;  %s1437_s15 = sphi %s1485_s15, %s1839_s15   ;;  %s1433_s14 = sphi %s1483_s14, %s1838_s14   ;;  %s1429_s13 = sphi %s1481_s13, %s1837_s13   ;;  %s1425_s12 = sphi %s1479_s12, %s1836_s12  }
   0xa   : > { %p37_p0 = scmp.ge.s32.totalorder %s35_s18, 2  ;;  %p83_p1 = scmp.ne.s32.totalorder %s1433_s14, %s1429_s13 }
   0xb   : > { %p84_p2 = scmp.eq.s32.totalorder %s1445_s17, 0  ;;  %p1112_p5 = scmp.lt.s32.totalorder %s1445_s17, 2 }
   0xc   : > { %s1842_s18 = smov (%p37_p0, %s35_s18), 0  ;;  %s186_s21 = sand.u32 1, %s1445_s17  }
   0xd   : > { %1817 = sst [smem:[#allocation13_spill]] %s1842_s18  ;;  %p85_p4 = por %p84_p2, %p83_p1 }
   0xe   : > { %s72_s20 = ssub.s32 %s1441_s16, %s1842_s18  ;;  %s188_s22 = sand.u32 1, %s1433_s14  }
   0xf   : > { %p74_p6 = scmp.eq.s32.totalorder %s72_s20, 0  ;;  %s1083_s23 = sshll.u32 %s1441_s16, 8 }
  0x10   : > { %s1001_s25 = sshll.u32 %s188_s22, 9  ;;  %s1818_s1 = sld [smem:[#allocation14_spill]] }
  0x11   : > { %s1527_s24 = scalar_select %p74_p6, %s1433_s14, %s76_s19  }
  0x12   : > { %p1536_p7 = pnand %p1112_p5, %p85_p4  ;;  %s190_s30 = scalar_lea.vmem [#allocation6], %s1001_s25 }
  0x13   : > { %s200_s4 = sshll.u32 %s190_s30, 4  ;;  %s1542_s5 = scalar_lea.sflag [#allocation7], %s186_s21  ;;  %s1540_s4 = int_to_ptr.vmem [resolvable:$true] %s200_s4 }
  0x14   : > { %s1819_s29 = scalar_select %p1536_p7, 1, 0 }
  0x15   : > { %p1810_p9 = pneg %p1536_p7 }
  0x16   : > { %s1534_s28 = scalar_lea.hbm %s1818_s1, %s1083_s23  ;;  %s1276_s9 = scalar_lea.hbm %s1818_s1, 16384 }
  0x17   : > { %s1271_s6 = scalar_lea.hbm %s1534_s28, 8192  ;;  %p1277_p12 = scmp.lt.u32.totalorder %s1534_s28, %s1818_s1 }
  0x18   : > { %p1272_p8 = scmp.ne.s32.totalorder %s1534_s28, %s1271_s6  ;;  %p1278_p13 = scmp.lt.u32.totalorder %s1276_s9, %s1271_s6 }
  0x19   : > { %p1280_p2 = scmp.lt.u32.totalorder %s1271_s6, %s1534_s28 }
  0x1a   : > { %p1274_p10 = pnand %p1810_p9, %p1272_p8  ;;  %p1279_p0 = por %p1278_p13, %p1277_p12 }
  0x1c   : > { %p1275_p11 = pneg %p1274_p10  ;;  %p1281_p4 = por %p1280_p2, %p1279_p0 }
  0x1e   : > { %p1282_p5 = pnand %p1281_p4, %p1275_p11 }
  0x20   : > { %1285 = shalt.err (!%p1282_p5)
}
  0x21   : > { %s1286_s19 = scalar_lea.vmem %s1540_s4, 8192  ;;  %s1447_s20 = smov [#allocation6]  }
  0x22   : > { %p1287_p6 = scmp.ne.s32.totalorder %s1540_s4, %s1286_s19  ;;  %s1291_s21 = sshll.u32 %s1447_s20, 4  ;;  %s1292_s21 = int_to_ptr.vmem [resolvable:$false] %s1291_s21 }
  0x23   : > { %s1293_s23 = scalar_lea.vmem %s1292_s21, 16384  ;;  %p1294_p3 = scmp.lt.s32.totalorder %s1540_s4, %s1292_s21 }
  0x24   : > { %p1289_p8 = pnand %p1287_p6, %p1810_p9  ;;  %p1295_p12 = scmp.lt.s32.totalorder %s1293_s23, %s1286_s19 }
  0x26   : > { %p1290_p10 = pneg %p1289_p8  ;;  %p1296_p13 = por %p1295_p12, %p1294_p3 }
  0x28   : > { %p1297_p0 = pnand %p1296_p13, %p1290_p10 }
  0x2a   : > { %1300 = shalt.err (!%p1297_p0)
}
  0x2b   : > { %s1448_s25 = smov 512   ;;  %s1449_s26 = smov 256  }
  0x2c   : > { %s1450_s27 = smov 16   ;;  %s1571_s30 = sadd.s32 4294967295, %s1445_s17  }
  0x2d   : > { %1103 = dma.hbm_to_vmem [thread:$0]  (!%p1536_p7), %s1534_s28, 8192, %s1540_s4, %s1542_s5, %s1448_s25, %s1449_s26, %s1450_s27  }
  0x2e   : > { %s997_s6 = sadd.s32 4294967294, %s1445_s17   ;;  %p89_p3 = scmp.ne.s32.totalorder %s1429_s13, %s1425_s12 }
  0x2f   : > { %p1809_p11 = scmp.eq.s32.totalorder %s1571_s30, 0  ;;  %p141_p2 = scmp.eq.s32.totalorder %s1571_s30, 1 }
  0x30   : > { %p147_p4 = scmp.eq.s32.totalorder %s997_s6, 1  ;;  %p998_p6 = scmp.ge.s32.totalorder %s1445_s17, 1 }
  0x31   : > { %p1580_p5 = por %p1809_p11, %p89_p3  ;;  %p1588_p8 = por %p141_p2, %p83_p1 }
  0x32   : > { %p1592_p10 = por %p147_p4, %p89_p3  ;;  %p154_p12 = scmp.lt.s32.totalorder %s1445_s17, 3 }
  0x33   : > { %s1820_s7 = scalar_select %p1580_p5, 1, 0 }
  0x34   : > { %s1821_s28 = scalar_select %p1588_p8, 1, 0 }
  0x35   : > { %s1822_s4 = scalar_select %p1592_p10, 1, 0 }
  0x36   : > { %p1597_p13 = pnand %p998_p6, %p154_p12  ;;  %s1451_s9 = smov [#allocation3]  }
  0x37   : > { %s172_s10 = sshll.u32 %s1451_s9, 4  ;;  %s1004_s11 = sshll.u32 %s188_s22, 2  ;;  %s1601_s10 = int_to_ptr.vmem [resolvable:$true] %s172_s10 }
  0x38   : > { %s1823_s8 = scalar_select %p1597_p13, 1, 0 }
  0x39   : > { %p1096_p0 = pneg %p1597_p13  ;;  %s1084_s19 = sshll.u32 %s1441_s16, 6 }
  0x3a   : > { %s1617_s25 = scalar_lea.hbm %s1806_s2, %s1084_s19  ;;  %s214_s26 = scalar_lea.vmem [#allocation8], %s1004_s11 }
  0x3b   : > { %p1610_p1 = pnand %p1096_p0, %p1809_p11  ;;  %s222_s27 = sshll.u32 %s214_s26, 4  ;;  %s1619_s27 = int_to_ptr.vmem [resolvable:$true] %s222_s27 }
  0x3c   : > { %s1301_s22 = scalar_lea.hbm %s1804_s0, 256 }
  0x3d   : > { %p1302_p3 = scmp.ne.s32.totalorder %s1804_s0, %s1301_s22  ;;  %p1303_p2 = pneg %p1610_p1 }
  0x3e   : > { %p1308_p12 = scmp.lt.u32.totalorder %s1301_s22, %s1804_s0 }
  0x3f   : > { %p1304_p4 = pnand %p1303_p2, %p1302_p3 }
  0x41   : > { %p1305_p6 = pneg %p1304_p4 }
  0x43   : > { %p1310_p0 = pnand %p1308_p12, %p1305_p6 }
  0x45   : > { %1313 = shalt.err (!%p1310_p0)
}
  0x46   : > { %s1314_s11 = scalar_lea.vmem %s1601_s10, 256  ;;  %p1322_p8 = scmp.lt.s32.totalorder %s1601_s10, %s1601_s10 }
  0x47   : > { %p1315_p11 = scmp.ne.s32.totalorder %s1601_s10, %s1314_s11  ;;  %p1323_p5 = scmp.lt.s32.totalorder %s1314_s11, %s1314_s11 }
  0x49   : > { %p1317_p9 = pnand %p1315_p11, %p1303_p2  ;;  %p1324_p13 = por %p1323_p5, %p1322_p8 }
  0x4b   : > { %p1318_p10 = pneg %p1317_p9 }
  0x4d   : > { %p1325_p7 = pnand %p1324_p13, %p1318_p10 }
  0x4f   : > { %1328 = shalt.err (!%p1325_p7)
}
  0x50   : > { %s1452_s1 = smov 128   ;;  %s1453_s18 = smov 8  }
  0x51   : > { %1099 = dma.hbm_to_vmem [thread:$0]  (!%p1610_p1), %s1804_s0, 256, %s1601_s10, [#allocation4], %s1452_s1, %s1452_s1, %s1453_s18  }
  0x52   : > { %s1329_s6 = scalar_lea.hbm %s1617_s25, 64  ;;  %p1825_p11 = scmp.ne.s32.totalorder %s1819_s29, 0 }
  0x53   : > { %p1330_p9 = scmp.ne.s32.totalorder %s1617_s25, %s1329_s6  ;;  %s1334_s21 = scalar_lea.hbm %s1806_s2, 128 }
  0x54   : > { %p1826_p5 = pneg %p1825_p11  ;;  %p1335_p10 = scmp.lt.u32.totalorder %s1617_s25, %s1806_s2 }
  0x55   : > { %p1336_p13 = scmp.lt.u32.totalorder %s1334_s21, %s1329_s6  ;;  %p1338_p2 = scmp.lt.u32.totalorder %s1329_s6, %s1617_s25 }
  0x56   : > { %p1332_p8 = pnand %p1330_p9, %p1826_p5 }
  0x57   : > { %p1337_p3 = por %p1336_p13, %p1335_p10 }
  0x58   : > { %p1333_p7 = pneg %p1332_p8 }
  0x59   : > { %p1339_p4 = por %p1338_p2, %p1337_p3 }
  0x5b   : > { %p1340_p6 = pnand %p1339_p4, %p1333_p7 }
  0x5d   : > { %1343 = shalt.err (!%p1340_p6)
}
  0x5e   : > { %s1344_s10 = scalar_lea.vmem %s1619_s27, 64  ;;  %p1827_p12 = pmov %p1826_p5 }
  0x5f   : > { %p1345_p1 = scmp.ne.s32.totalorder %s1619_s27, %s1344_s10  ;;  %s1454_s20 = smov [#allocation8]  }
  0x60   : > { %s1349_s1 = sshll.u32 %s1454_s20, 4  ;;  %s1350_s1 = int_to_ptr.vmem [resolvable:$false] %s1349_s1 }
  0x61   : > { %p1347_p0 = pnand %p1345_p1, %p1827_p12  ;;  %s1351_s18 = scalar_lea.vmem %s1350_s1, 128 }
  0x62   : > { %p1352_p5 = scmp.lt.s32.totalorder %s1619_s27, %s1350_s1  ;;  %p1353_p8 = scmp.lt.s32.totalorder %s1351_s18, %s1344_s10 }
  0x63   : > { %p1348_p9 = pneg %p1347_p0 }
  0x64   : > { %p1354_p10 = por %p1353_p8, %p1352_p5 }
  0x66   : > { %p1355_p13 = pnand %p1354_p10, %p1348_p9 }
  0x68   : > { %1358 = shalt.err (!%p1355_p13)
}
  0x69   : > { %1106 = dma.hbm_to_vmem [thread:$0]  (!%p1825_p11), %s1617_s25, 64, %s1619_s27, %s1542_s5  }
  0x6a   : > { %p1828_p7 = scmp.ne.s32.totalorder %s1823_s8, 0 }
  0x6b   : > { %p1829_p3 = scmp.eq.s32.totalorder (!%p1828_p7), %s1571_s30, 0 }
  0x6c   : > { %231 = sbr.rel (%p1828_p7) target bundleno = 419 (0x1a3), region = 32 }
  0x73   : > { %1412 = dma.done.wait (%p1829_p3), [#allocation4], 256   ;;  %p1830_p2 = pmov %p1829_p3 }
  0x74   : > { %s237_s19 = sand.u32 1, %s1571_s30   ;;  %s1674_s26 = sand.u32 1, %s1429_s13  }
  0x75   : > { %1414 = vsyncadd (%p1830_p2), [#allocation4], 4294967040  ;;  %s1009_s29 = sshll.u32 %s1674_s26, 9  ;;  %s238_s6 = scalar_lea.sflag [#allocation7], %s237_s19 }
  0x76   : > { %s1677_s9 = scalar_lea.vmem [#allocation6], %s1009_s29  ;;  %p1831_p11 = scmp.ne.s32.totalorder %s1820_s7, 0 }
  0x78   : > { %1416 = dma.done.wait (%p1831_p11), %s238_s6, 8256  }
  0x79   : > { %1418 = vsyncadd (%p1831_p11), %s238_s6, 4294959040  ;;  %v1172_v0 = vld [vmem:[%s1677_s9 + $0x4] ss:$16 sps:$4 sm:$0xff]   ;;  %v1174_v1 = vld [vmem:[%s1677_s9 + $0xc] ss:$16 sps:$4 sm:$0xff]   ;;  %s1010_s5 = sshll.u32 %s1674_s26, 2 }
  0x7a   : > { %701 = vmatprep.subr.bf16.mxu0 %v1172_v0  ;;  %v1176_v2 = vld [vmem:[%s1677_s9] ss:$16 sps:$4 sm:$0xff]   ;;  %v1177_v3 = vld [vmem:[%s1677_s9 + $0x8] ss:$16 sps:$4 sm:$0xff]   ;;  %744 = vmatprep.subr.bf16.mxu1 %v1174_v1  ;;  %v1178_v4 = vld [vmem:[%s1677_s9 + $0x24] ss:$16 sps:$4 sm:$0xff]  }
  0x7b   : > { %702 = vmatpush1.bf16.msra.mxu0 %v1176_v2  ;;  %745 = vmatpush1.bf16.msra.mxu1 %v1177_v3  ;;  %v1180_v5 = vld [vmem:[%s1677_s9 + $0x2c] ss:$16 sps:$4 sm:$0xff]   ;;  %v1182_v6 = vld [vmem:[%s1677_s9 + $0x20] ss:$16 sps:$4 sm:$0xff]   ;;  %v1183_v7 = vld [vmem:[%s1677_s9 + $0x28] ss:$16 sps:$4 sm:$0xff]   ;;  %v816_v2 = vlaneseq }
  0x7c   : > { %703 = vmatprep.subr.bf16.mxu0 %v1178_v4  ;;  %746 = vmatprep.subr.bf16.mxu1 %v1180_v5  ;;  %v1184_v8 = vld [vmem:[%s1677_s9 + $0x44] ss:$16 sps:$4 sm:$0xff]   ;;  %v1186_v9 = vld [vmem:[%s1677_s9 + $0x4c] ss:$16 sps:$4 sm:$0xff]   ;;  %v1188_v10 = vld [vmem:[%s1677_s9 + $0x40] ss:$16 sps:$4 sm:$0xff]  }
  0x7d   : > { %v1189_v11 = vld [vmem:[%s1677_s9 + $0x48] ss:$16 sps:$4 sm:$0xff]   ;;  %v1190_v12 = vld [vmem:[%s1677_s9 + $0x64] ss:$16 sps:$4 sm:$0xff]   ;;  %v1192_v13 = vld [vmem:[%s1677_s9 + $0x6c] ss:$16 sps:$4 sm:$0xff]  }
  0x7e   : > { %v1194_v14 = vld [vmem:[%s1677_s9 + $0x60] ss:$16 sps:$4 sm:$0xff]   ;;  %v1195_v15 = vld [vmem:[%s1677_s9 + $0x68] ss:$16 sps:$4 sm:$0xff]   ;;  %v1196_v16 = vld [vmem:[%s1677_s9 + $0x84] ss:$16 sps:$4 sm:$0xff]  }
  0x7f   : > { %704 = vmatpush1.bf16.msra.mxu0 %v1182_v6  ;;  %747 = vmatpush1.bf16.msra.mxu1 %v1183_v7  ;;  %v1198_v17 = vld [vmem:[%s1677_s9 + $0x8c] ss:$16 sps:$4 sm:$0xff]   ;;  %v1200_v18 = vld [vmem:[%s1677_s9 + $0x80] ss:$16 sps:$4 sm:$0xff]   ;;  %v1201_v19 = vld [vmem:[%s1677_s9 + $0x88] ss:$16 sps:$4 sm:$0xff]  }
  0x80   : > { %705 = vmatprep.subr.bf16.mxu0 %v1184_v8  ;;  %748 = vmatprep.subr.bf16.mxu1 %v1186_v9  ;;  %v1202_v20 = vld [vmem:[%s1677_s9 + $0xa4] ss:$16 sps:$4 sm:$0xff]   ;;  %v1204_v21 = vld [vmem:[%s1677_s9 + $0xac] ss:$16 sps:$4 sm:$0xff]   ;;  %v1206_v22 = vld [vmem:[%s1677_s9 + $0xa0] ss:$16 sps:$4 sm:$0xff]  }
  0x81   : > { %v1207_v23 = vld [vmem:[%s1677_s9 + $0xa8] ss:$16 sps:$4 sm:$0xff]   ;;  %v1208_v24 = vld [vmem:[%s1677_s9 + $0xc4] ss:$16 sps:$4 sm:$0xff]   ;;  %v1210_v25 = vld [vmem:[%s1677_s9 + $0xcc] ss:$16 sps:$4 sm:$0xff]  }
  0x82   : > { %v1212_v26 = vld [vmem:[%s1677_s9 + $0xc0] ss:$16 sps:$4 sm:$0xff]   ;;  %v1213_v27 = vld [vmem:[%s1677_s9 + $0xc8] ss:$16 sps:$4 sm:$0xff]   ;;  %v1214_v28 = vld [vmem:[%s1677_s9 + $0xe4] ss:$16 sps:$4 sm:$0xff]  }
  0x83   : > { %706 = vmatpush1.bf16.msra.mxu0 %v1188_v10  ;;  %749 = vmatpush1.bf16.msra.mxu1 %v1189_v11  ;;  %v1216_v29 = vld [vmem:[%s1677_s9 + $0xec] ss:$16 sps:$4 sm:$0xff]   ;;  %v1218_v30 = vld [vmem:[%s1677_s9 + $0xe0] ss:$16 sps:$4 sm:$0xff]   ;;  %v1219_v31 = vld [vmem:[%s1677_s9 + $0xe8] ss:$16 sps:$4 sm:$0xff]  }
  0x84   : > { %707 = vmatprep.subr.bf16.mxu0 %v1190_v12  ;;  %750 = vmatprep.subr.bf16.mxu1 %v1192_v13  ;;  %v1220_v32 = vld [vmem:[%s1677_s9 + $0x104] ss:$16 sps:$4 sm:$0xff]   ;;  %v1222_v33 = vld [vmem:[%s1677_s9 + $0x10c] ss:$16 sps:$4 sm:$0xff]   ;;  %v1224_v34 = vld [vmem:[%s1677_s9 + $0x100] ss:$16 sps:$4 sm:$0xff]  }
  0x85   : > { %v1225_v35 = vld [vmem:[%s1677_s9 + $0x108] ss:$16 sps:$4 sm:$0xff]   ;;  %v1226_v36 = vld [vmem:[%s1677_s9 + $0x124] ss:$16 sps:$4 sm:$0xff]   ;;  %v1228_v37 = vld [vmem:[%s1677_s9 + $0x12c] ss:$16 sps:$4 sm:$0xff]  }
  0x86   : > { %v1230_v38 = vld [vmem:[%s1677_s9 + $0x120] ss:$16 sps:$4 sm:$0xff]   ;;  %v1231_v39 = vld [vmem:[%s1677_s9 + $0x128] ss:$16 sps:$4 sm:$0xff]   ;;  %v1232_v40 = vld [vmem:[%s1677_s9 + $0x144] ss:$16 sps:$4 sm:$0xff]  }
  0x87   : > { %708 = vmatpush1.bf16.msra.mxu0 %v1194_v14  ;;  %751 = vmatpush1.bf16.msra.mxu1 %v1195_v15  ;;  %v1234_v41 = vld [vmem:[%s1677_s9 + $0x14c] ss:$16 sps:$4 sm:$0xff]   ;;  %v1236_v42 = vld [vmem:[%s1677_s9 + $0x140] ss:$16 sps:$4 sm:$0xff]   ;;  %v1237_v43 = vld [vmem:[%s1677_s9 + $0x148] ss:$16 sps:$4 sm:$0xff]  }
  0x88   : > { %709 = vmatprep.subr.bf16.mxu0 %v1196_v16  ;;  %752 = vmatprep.subr.bf16.mxu1 %v1198_v17  ;;  %v1238_v44 = vld [vmem:[%s1677_s9 + $0x164] ss:$16 sps:$4 sm:$0xff]   ;;  %v1240_v45 = vld [vmem:[%s1677_s9 + $0x16c] ss:$16 sps:$4 sm:$0xff]   ;;  %v1242_v47 = vld [vmem:[%s1677_s9 + $0x160] ss:$16 sps:$4 sm:$0xff]  }
  0x89   : > { %v1270_v46 = vld [vmem:[#allocation3 + $0x4] ss:$8 sps:$4 sm:$0xff]   ;;  %v1243_v48 = vld [vmem:[%s1677_s9 + $0x168] ss:$16 sps:$4 sm:$0xff]   ;;  %v1248_v51 = vld [vmem:[%s1677_s9 + $0x180] ss:$16 sps:$4 sm:$0xff]  }
  0x8a   : > { %v1244_v49 = vld [vmem:[%s1677_s9 + $0x184] ss:$16 sps:$4 sm:$0xff]   ;;  %v1246_v50 = vld [vmem:[%s1677_s9 + $0x18c] ss:$16 sps:$4 sm:$0xff]   ;;  %733 = vmatprep.mubr.bf16.mxu0 %v1270_v46  ;;  %776 = vmatprep.mubr.bf16.mxu1 %v1270_v46  ;;  %v1249_v52 = vld [vmem:[%s1677_s9 + $0x188] ss:$16 sps:$4 sm:$0xff]  }
  0x8b   : > { %710 = vmatpush1.bf16.msra.mxu0 %v1200_v18  ;;  %753 = vmatpush1.bf16.msra.mxu1 %v1201_v19  ;;  %v1250_v53 = vld [vmem:[%s1677_s9 + $0x1a4] ss:$16 sps:$4 sm:$0xff]   ;;  %v1252_v54 = vld [vmem:[%s1677_s9 + $0x1ac] ss:$16 sps:$4 sm:$0xff]   ;;  %v1254_v55 = vld [vmem:[%s1677_s9 + $0x1a0] ss:$16 sps:$4 sm:$0xff]  }
  0x8c   : > { %711 = vmatprep.subr.bf16.mxu0 %v1202_v20  ;;  %754 = vmatprep.subr.bf16.mxu1 %v1204_v21  ;;  %v1255_v56 = vld [vmem:[%s1677_s9 + $0x1a8] ss:$16 sps:$4 sm:$0xff]   ;;  %v1256_v57 = vld [vmem:[%s1677_s9 + $0x1c4] ss:$16 sps:$4 sm:$0xff]   ;;  %v1258_v58 = vld [vmem:[%s1677_s9 + $0x1cc] ss:$16 sps:$4 sm:$0xff]  }
  0x8d   : > { %v1260_v59 = vld [vmem:[%s1677_s9 + $0x1c0] ss:$16 sps:$4 sm:$0xff]   ;;  %v1261_v60 = vld [vmem:[%s1677_s9 + $0x1c8] ss:$16 sps:$4 sm:$0xff]   ;;  %v1262_v61 = vld [vmem:[%s1677_s9 + $0x1e4] ss:$16 sps:$4 sm:$0xff]  }
  0x8e   : > { %v1264_v62 = vld [vmem:[%s1677_s9 + $0x1ec] ss:$16 sps:$4 sm:$0xff]   ;;  %v1266_v63 = vld [vmem:[%s1677_s9 + $0x1e0] ss:$16 sps:$4 sm:$0xff]   ;;  %v1267_v0 = vld [vmem:[%s1677_s9 + $0x1e8] ss:$16 sps:$4 sm:$0xff]  }
  0x8f   : > { %712 = vmatpush1.bf16.msra.mxu0 %v1206_v22  ;;  %755 = vmatpush1.bf16.msra.mxu1 %v1207_v23  ;;  %v1268_v1 = vld [vmem:[#allocation3] ss:$8 sps:$4 sm:$0xff]   ;;  %v817_v3 = vshrl.u32 %v816_v2, 7  ;;  %s250_s30 = scalar_lea.vmem [#allocation8], %s1010_s5  ;;  %s1011_s7 = sshll.u32 %s1674_s26, 6 }
  0x90   : > { %713 = vmatprep.subr.bf16.mxu0 %v1208_v24  ;;  %756 = vmatprep.subr.bf16.mxu1 %v1210_v25  ;;  %v814_v6 = vld [vmem:[%s250_s30] sm:$0xf]  ;;  %s277_s8 = scalar_lea.vmem [#allocation9], %s1011_s7  ;;  %s1085_s27 = sshll.u32 %s1437_s15, 9 }
  0x91   : > { %v818_v4 = vsub.s32 0, %v817_v3  ;;  %v826_v5 = vsub.s32 2, %v817_v3  ;;  %v822_v7 = vsub.s32 1, %v817_v3  ;;  %v830_v8 = vsub.s32 3, %v817_v3  ;;  %s869_s25 = sshll.u32 %s277_s8, 4  ;;  %s1755_s21 = scalar_lea.hbm %s1807_s3, %s1085_s27  ;;  %s1750_s25 = int_to_ptr.vmem [resolvable:$true] %s869_s25 }
  0x92   : > { %s853_s23 = scalar_lea.sflag [#allocation5], %s1674_s26  ;;  %s1359_s11 = scalar_lea.vmem %s1750_s25, 1024 }
  0x93   : > { %714 = vmatpush1.bf16.msra.mxu0 %v1212_v26  ;;  %757 = vmatpush1.bf16.msra.mxu1 %v1213_v27  ;;  %v819_v9 = vrot.slane %v814_v6, %v818_v4  ;;  %v827_v10 = vrot.slane %v814_v6, %v826_v5  ;;  %v823_v11 = vrot.slane %v814_v6, %v822_v7  ;;  %p1360_p4 = scmp.ne.s32.totalorder %s1750_s25, %s1359_s11  ;;  %p1832_p6 = scmp.ne.s32.totalorder %s1821_s28, 0 }
  0x94   : > { %715 = vmatprep.subr.bf16.mxu0 %v1214_v28  ;;  %758 = vmatprep.subr.bf16.mxu1 %v1216_v29  ;;  %v831_v12 = vrot.slane %v814_v6, %v830_v8  ;;  %s1455_s10 = smov [#allocation9]  }
  0x95   : > { %p1361_p1 = pnand %p1360_p4, %p1832_p6  ;;  %s1363_s20 = sshll.u32 %s1455_s10, 4  ;;  %s1364_s20 = int_to_ptr.vmem [resolvable:$false] %s1363_s20 }
  0x96   : > { %s1365_s1 = scalar_lea.vmem %s1364_s20, 2048  ;;  %p1366_p0 = scmp.lt.s32.totalorder %s1750_s25, %s1364_s20 }
  0x97   : > { %716 = vmatpush1.bf16.msra.mxu0 %v1218_v30  ;;  %759 = vmatpush1.bf16.msra.mxu1 %v1219_v31  ;;  %p1362_p12 = pneg %p1361_p1  ;;  %p1367_p9 = scmp.lt.s32.totalorder %s1365_s1, %s1359_s11 }
  0x98   : > { %717 = vmatprep.subr.bf16.mxu0 %v1220_v32  ;;  %760 = vmatprep.subr.bf16.mxu1 %v1222_v33 }
  0x99   : > { %p1368_p5 = por %p1367_p9, %p1366_p0 }
  0x9b   : > { %718 = vmatpush1.bf16.msra.mxu0 %v1224_v34  ;;  %761 = vmatpush1.bf16.msra.mxu1 %v1225_v35  ;;  %p1369_p8 = pnand %p1368_p5, %p1362_p12 }
  0x9c   : > { %719 = vmatprep.subr.bf16.mxu0 %v1226_v36  ;;  %762 = vmatprep.subr.bf16.mxu1 %v1228_v37 }
  0x9f   : > { %720 = vmatpush1.bf16.msra.mxu0 %v1230_v38  ;;  %763 = vmatpush1.bf16.msra.mxu1 %v1231_v39 }
  0xa0   : > { %721 = vmatprep.subr.bf16.mxu0 %v1232_v40  ;;  %764 = vmatprep.subr.bf16.mxu1 %v1234_v41 }
  0xa3   : > { %722 = vmatpush1.bf16.msra.mxu0 %v1236_v42  ;;  %765 = vmatpush1.bf16.msra.mxu1 %v1237_v43 }
  0xa4   : > { %723 = vmatprep.subr.bf16.mxu0 %v1238_v44  ;;  %766 = vmatprep.subr.bf16.mxu1 %v1240_v45 }
  0xa7   : > { %724 = vmatpush1.bf16.msra.mxu0 %v1242_v47  ;;  %767 = vmatpush1.bf16.msra.mxu1 %v1243_v48 }
  0xa8   : > { %725 = vmatprep.subr.bf16.mxu0 %v1244_v49  ;;  %768 = vmatprep.subr.bf16.mxu1 %v1246_v50 }
  0xab   : > { %726 = vmatpush1.bf16.msra.mxu0 %v1248_v51  ;;  %769 = vmatpush1.bf16.msra.mxu1 %v1249_v52 }
  0xac   : > { %727 = vmatprep.subr.bf16.mxu0 %v1250_v53  ;;  %770 = vmatprep.subr.bf16.mxu1 %v1252_v54 }
  0xaf   : > { %728 = vmatpush1.bf16.msra.mxu0 %v1254_v55  ;;  %771 = vmatpush1.bf16.msra.mxu1 %v1255_v56 }
  0xb0   : > { %729 = vmatprep.subr.bf16.mxu0 %v1256_v57  ;;  %772 = vmatprep.subr.bf16.mxu1 %v1258_v58 }
  0xb3   : > { %730 = vmatpush1.bf16.msra.mxu0 %v1260_v59  ;;  %773 = vmatpush1.bf16.msra.mxu1 %v1261_v60 }
  0xb4   : > { %731 = vmatprep.subr.bf16.mxu0 %v1262_v61  ;;  %774 = vmatprep.subr.bf16.mxu1 %v1264_v62 }
  0xb7   : > { %732 = vmatpush1.bf16.msra.mxu0 %v1266_v63  ;;  %775 = vmatpush1.bf16.msra.mxu1 %v1267_v0 }
  0xba   : > { %734 = vmatmul.mubr.bf16.vlgmr.msra.gmra.mrb[0].mxu0 %v1268_v1  ;;  %777 = vmatmul.mubr.bf16.vlgmr.msra.gmra.mrb[0].mxu1 %v1268_v1 }
 0x18d   : > { %v735_v13 = vpop.f32.mrb[0].mxu0  ;;  %v778_v14 = vpop.f32.mrb[0].mxu1 }
 0x18e   : > { %v836_v15 = vadd.f32 %v819_v9, %v735_v13  ;;  %v838_v16 = vadd.f32 %v827_v10, %v778_v14  ;;  %v737_v17 = vpop.f32.mrb[1].mxu0  ;;  %v780_v18 = vpop.f32.mrb[1].mxu1 }
 0x18f   : > { %v837_v19 = vadd.f32 %v823_v11, %v737_v17  ;;  %v839_v20 = vadd.f32 %v831_v12, %v780_v18  ;;  %v739_v21 = vpop.f32.mrb[2].mxu0  ;;  %v782_v22 = vpop.f32.mrb[2].mxu1 }
 0x190   : > { %844 = vst [vmem:[%s277_s8] sm:$0xff] %v836_v15  ;;  %846 = vst [vmem:[%s277_s8 + $0x10] sm:$0xff] %v838_v16  ;;  %v840_v23 = vadd.f32 %v819_v9, %v739_v21  ;;  %v842_v24 = vadd.f32 %v827_v10, %v782_v22  ;;  %v741_v25 = vpop.f32.mrb[3].mxu0  ;;  %v784_v26 = vpop.f32.mrb[3].mxu1 }
 0x191   : > { %845 = vst [vmem:[%s277_s8 + $0x8] sm:$0xff] %v837_v19  ;;  %847 = vst [vmem:[%s277_s8 + $0x18] sm:$0xff] %v839_v20  ;;  %v841_v27 = vadd.f32 %v823_v11, %v741_v25  ;;  %v843_v28 = vadd.f32 %v831_v12, %v784_v26 }
 0x192   : > { %848 = vst [vmem:[%s277_s8 + $0x20] sm:$0xff] %v840_v23  ;;  %850 = vst [vmem:[%s277_s8 + $0x30] sm:$0xff] %v842_v24 }
 0x193   : > { %849 = vst [vmem:[%s277_s8 + $0x28] sm:$0xff] %v841_v27  ;;  %851 = vst [vmem:[%s277_s8 + $0x38] sm:$0xff] %v843_v28 }
 0x194   : > { %1372 = shalt.err (!%p1369_p8)
}
 0x195   : > { %s1373_s18 = scalar_lea.hbm %s1755_s21, 1024  ;;  %s1377_s6 = scalar_lea.hbm %s1807_s3, 2048 }
 0x196   : > { %p1374_p10 = scmp.ne.s32.totalorder %s1755_s21, %s1373_s18  ;;  %p1378_p3 = scmp.lt.u32.totalorder %s1755_s21, %s1807_s3 }
 0x197   : > { %p1379_p2 = scmp.lt.u32.totalorder %s1377_s6, %s1373_s18  ;;  %p1381_p4 = scmp.lt.u32.totalorder %s1373_s18, %s1755_s21 }
 0x198   : > { %p1375_p13 = pnand %p1374_p10, %p1832_p6 }
 0x199   : > { %p1380_p11 = por %p1379_p2, %p1378_p3 }
 0x19a   : > { %p1376_p7 = pneg %p1375_p13 }
 0x19b   : > { %p1382_p1 = por %p1381_p4, %p1380_p11 }
 0x19d   : > { %p1383_p12 = pnand %p1382_p1, %p1376_p7 }
 0x19f   : > { %1386 = shalt.err (!%p1383_p12)
}
 0x1a0   : > { %s1456_s30 = smov 512   ;;  %s1457_s7 = smov 1024  }
 0x1a1   : > { %s1458_s8 = smov 32  }
 0x1a2   : > { %1094 = dma.vmem_to_hbm [thread:$0]  (%p1832_p6), %s1750_s25, 1024, %s1755_s21, %s853_s23, %s1456_s30, %s1457_s7, %s1458_s8  }
 0x1a3 PF: > { %s884_s27 = sand.u32 1, %s1425_s12   ;;  %p1833_p0 = scmp.ne.s32.totalorder %s1822_s4, 0 }
 0x1a4   : > { %p1834_p9 = scmp.ge.s32.totalorder %s1445_s17, 2  ;;  %s885_s15 = scalar_lea.sflag [#allocation5], %s884_s27 }
 0x1a6   : > { %p1108_p5 = pnand %p1834_p9, %p1833_p0 }
 0x1a8   : > { %1420 = dma.done.wait (!%p1108_p5), %s885_s15, 1024  }
 0x1a9   : > { %1422 = vsyncadd (!%p1108_p5), %s885_s15, 4294966272  ;;  %s20_s17 = sadd.s32 1, %s1445_s17   ;;  %s1835_s28 = sld [smem:[#allocation13_spill]] }
 0x1aa   : > { %p17_p8 = scmp.ge.s32.totalorder %s20_s17, 4   ;;  %s1836_s12 = smov %s1429_s13 }
 0x1ab   : > { %s1837_s13 = smov %s1433_s14  ;;  %s1838_s14 = smov %s1527_s24 }
 0x1ac   : > { %s1839_s15 = smov %s1441_s16  ;;  %19 = sbr.rel (!%p17_p8) target bundleno = 9 (0x9), region = 102 }
 0x1af   : > { %s1840_s16 = smov %s1835_s28 }
 0x1b3   :  { %890 = vsyncpa [#allocation4], 1 }
 0x1b4   :  { %892 = vsyncpa [#allocation4 + $0x1], 1 }
 0x1b5   :  { %893 = vsyncpa [#allocation7], 1 }
 0x1b6   :  { %895 = vsyncpa [#allocation7 + $0x1], 1 }
 0x1b7   :  { %896 = vsyncpa [#allocation5], 1 }
 0x1b8   :  { %898 = vsyncpa [#allocation5 + $0x1], 1 }

</bundles_post_ra>
